<compile_context>
chip_gen: v7x
topology: tpu7x:2x2x1
jax: 0.10.0
libtpu: 0.0.40
codegen_flags: <defaults>
</compile_context>

<pallas_src>
import jax
import jax.numpy as jnp
from jax import lax
from jax.experimental import pallas as pl
from jax.experimental.pallas import tpu as pltpu

NEG_SLOPE = 0.05


def _make_kernel(c, ho, wq):
    """Kernel closure over static ints: channels, output rows, parity-plane width."""
    L = ho * wq  # lane-dense output slab width (valid cols are ow < wq-1)

    def kernel(x0_ref, x1_ref, x2_ref, w_ref, b_ref, o_ref):
        # x{kd}_ref : (1, 2, 2, 1, C, S)  padded input slab for depth 2*od + kd,
        #             axes = (n, h_parity, w_parity, depth, C, flat(Hq,Wq)+1)
        # w_ref     : (C, 27*C)  columns [t*C:(t+1)*C] = weight[:, :, kd, kh, kw]
        # b_ref     : (C, 1)
        # o_ref     : (1, 1, C, L)
        x_refs = (x0_ref, x1_ref, x2_ref)
        acc = jnp.zeros((c, L), jnp.float32)
        for kd in range(3):
            xk = x_refs[kd]
            for kh in range(3):
                ph, dh = kh % 2, kh // 2
                for kw in range(3):
                    pw, dw = kw % 2, kw // 2
                    t = (kd * 3 + kh) * 3 + kw
                    # Tap input: (Cin, L) window at static lane offset dh*Wq + dw.
                    xt = xk[0, ph, pw, 0, :, pl.ds(dh * wq + dw, L)]
                    # Tap weight: (Cout, Cin).
                    wt = w_ref[:, pl.ds(t * c, c)]
                    acc = acc + jnp.dot(wt, xt, preferred_element_type=jnp.float32)
        acc = acc + b_ref[...]                                  # bias (C,1) broadcast
        acc = jnp.where(acc >= 0, acc, NEG_SLOPE * acc)         # LeakyReLU(0.05)
        o_ref[0, 0, :, :] = acc.astype(o_ref.dtype)

    return kernel


@jax.jit
def spatial_downsampling(x_ncdhw, weight, bias):
    """x: (N, C, D, H, W); weight: (C, C, 3, 3, 3) [PyTorch OIDHW]; bias: (C,)."""
    n, c, d, h, w = x_ncdhw.shape
    do = (d + 1) // 2
    ho = (h + 1) // 2
    wo = (w + 1) // 2
    dp = 2 * do + 1          # padded depth actually needed
    hq = ho + 1              # parity-plane height (incl. halo)
    wq = wo + 1              # parity-plane width  (incl. halo)
    L = ho * wq
    s_flat = hq * wq + 1     # flattened parity plane + 1 pad element

    # ---- single layout pass (XLA): pad + H/W parity split + flatten ----
    x_pad = jnp.pad(
        x_ncdhw,
        ((0, 0), (0, 0),
         (1, dp - 1 - d), (1, 2 * hq - 1 - h), (1, 2 * wq - 1 - w)))
    # (N,C,Dp,2Hq,2Wq) -> (N,C,Dp,Hq,2,Wq,2) -> (N, ph, pw, Dp, C, Hq, Wq)
    xr = x_pad.reshape(n, c, dp, hq, 2, wq, 2)
    xr = jnp.transpose(xr, (0, 4, 6, 2, 1, 3, 5))
    xr = xr.reshape(n, 2, 2, dp, c, hq * wq)
    xr = jnp.pad(xr, ((0, 0),) * 5 + ((0, 1),))       # -> (..., s_flat)

    # Weights: (Cout, Cin, 3,3,3) -> (Cout, 27*Cin), tap-major columns.
    w2 = jnp.transpose(weight, (0, 2, 3, 4, 1)).reshape(c, 27 * c)
    b2 = bias.reshape(c, 1)

    kernel = _make_kernel(c, ho, wq)
    x_block = (1, 2, 2, 1, c, s_flat)

    def x_map(kd):
        return lambda ni, di: (ni, 0, 0, 2 * di + kd, 0, 0)

    flops = int(2 * 27 * c * c * n * do * L)
    bytes_accessed = int(1.5 * xr.size * xr.dtype.itemsize
                         + w2.size * w2.dtype.itemsize
                         + b2.size * b2.dtype.itemsize
                         + n * do * c * L * x_ncdhw.dtype.itemsize)

    out_flat = pl.pallas_call(
        kernel,
        out_shape=jax.ShapeDtypeStruct((n, do, c, L), x_ncdhw.dtype),
        grid_spec=pltpu.PrefetchScalarGridSpec(
            num_scalar_prefetch=0,
            grid=(n, do),
            in_specs=[
                pl.BlockSpec(x_block, x_map(0)),                  # depth slice 2*od
                pl.BlockSpec(x_block, x_map(1)),                  # depth slice 2*od+1
                pl.BlockSpec(x_block, x_map(2)),                  # depth slice 2*od+2
                pl.BlockSpec((c, 27 * c), lambda ni, di: (0, 0)),  # weights (resident)
                pl.BlockSpec((c, 1), lambda ni, di: (0, 0)),       # bias (resident)
            ],
            out_specs=pl.BlockSpec((1, 1, c, L), lambda ni, di: (ni, di, 0, 0)),
        ),
        compiler_params=pltpu.CompilerParams(
            dimension_semantics=("parallel", "parallel")),
        cost_estimate=pl.CostEstimate(
            flops=flops, transcendentals=0, bytes_accessed=bytes_accessed),
    )(xr, xr, xr, w2, b2)

    # (N, Do, C, Ho*Wq) -> (N, C, Do, Ho, Wo): only the 8x-smaller output is reshuffled.
    out = out_flat.reshape(n, do, c, ho, wq)[:, :, :, :, :wo]
    return jnp.transpose(out, (0, 2, 1, 3, 4))


def _reference(x_ncdhw, weight, bias):
    """Pure-JAX reference (lax conv) for correctness check."""
    y = lax.conv_general_dilated(
        x_ncdhw, weight,
        window_strides=(2, 2, 2),
        padding=((1, 1), (1, 1), (1, 1)),
        dimension_numbers=("NCDHW", "OIDHW", "NCDHW"),
    )
    y = y + bias.reshape(1, -1, 1, 1, 1)
    return jnp.where(y >= 0, y, NEG_SLOPE * y)


if __name__ == "__main__":
    key = jax.random.PRNGKey(0)
    kx, kw_, kb = jax.random.split(key, 3)

    N, C, D, H, W = 2, 4, 16, 16, 16
    x = jax.random.normal(kx, (N, C, D, H, W), dtype=jnp.float32)

    fan_in = C * 3 * 3 * 3
    bound = 1.0 / (fan_in ** 0.5)
    weight = jax.random.uniform(kw_, (C, C, 3, 3, 3), jnp.float32, -bound, bound)
    bias = jax.random.uniform(kb, (C,), jnp.float32, -bound, bound)

    out = jax.block_until_ready(spatial_downsampling(x, weight, bias))
    ref = _reference(x, weight, bias)
    assert out.shape == (N, C, D // 2, H // 2, W // 2), out.shape
    assert jnp.allclose(out, ref, atol=1e-4, rtol=1e-4), float(jnp.max(jnp.abs(out - ref)))

    # Odd spatial dims (exercises the (dim+1)//2 output-size fix).
    x_odd = jax.random.normal(kx, (1, C, 5, 7, 9), dtype=jnp.float32)
    out_odd = jax.block_until_ready(spatial_downsampling(x_odd, weight, bias))
    ref_odd = _reference(x_odd, weight, bias)
    assert out_odd.shape == (1, C, 3, 4, 5), out_odd.shape
    assert jnp.allclose(out_odd, ref_odd, atol=1e-4, rtol=1e-4), \
        float(jnp.max(jnp.abs(out_odd - ref_odd)))

    print("KERNEL_OK")
</pallas_src>

<mosaic_0001>
module attributes {stable_mosaic.version = 11 : i64} {
  func.func @kernel(%arg0: i32, %arg1: i32, %arg2: memref<1x2x2x1x4x82xf32, #tpu.memory_space<vmem>>, %arg3: memref<1x2x2x1x4x82xf32, #tpu.memory_space<vmem>>, %arg4: memref<1x2x2x1x4x82xf32, #tpu.memory_space<vmem>>, %arg5: memref<4x108xf32, #tpu.memory_space<vmem>>, %arg6: memref<4x1xf32, #tpu.memory_space<vmem>>, %arg7: memref<1x1x4x72xf32, #tpu.memory_space<vmem>>) attributes {dimension_semantics = [#tpu.dimension_semantics<parallel>, #tpu.dimension_semantics<parallel>], iteration_bounds = array<i64: 2, 8>, scalar_prefetch = 0 : i64, scratch_operands = 0 : i64, tpu.core_type = #tpu.core_type<tc>, window_params = [{transform_indices = @transform_0, window_bounds = array<i64: 1, 2, 2, 1, 4, 82>}, {transform_indices = @transform_1, window_bounds = array<i64: 1, 2, 2, 1, 4, 82>}, {transform_indices = @transform_2, window_bounds = array<i64: 1, 2, 2, 1, 4, 82>}, {pipeline_mode = #tpu.pipeline_mode<synchronous>, transform_indices = @transform_3, window_bounds = array<i64: 4, 108>}, {pipeline_mode = #tpu.pipeline_mode<synchronous>, transform_indices = @transform_4, window_bounds = array<i64: 4, 1>}, {transform_indices = @transform_5, window_bounds = array<i64: 1, 1, 4, 72>}]} {
    %cst = arith.constant 0.000000e+00 : f32
    %0 = vector.broadcast %cst : f32 to vector<4x72xf32>
    %c0 = arith.constant 0 : index
    %c0_0 = arith.constant 0 : index
    %c0_1 = arith.constant 0 : index
    %c0_2 = arith.constant 0 : index
    %c0_3 = arith.constant 0 : index
    %c0_4 = arith.constant 0 : index
    %1 = vector.load %arg2[%c0, %c0_0, %c0_1, %c0_2, %c0_3, %c0_4] : memref<1x2x2x1x4x82xf32, #tpu.memory_space<vmem>>, vector<1x1x1x1x4x72xf32>
    %2 = vector.shape_cast %1 : vector<1x1x1x1x4x72xf32> to vector<4x72xf32>
    %c0_5 = arith.constant 0 : index
    %c0_6 = arith.constant 0 : index
    %3 = vector.load %arg5[%c0_5, %c0_6] : memref<4x108xf32, #tpu.memory_space<vmem>>, vector<4x4xf32>
    %cst_7 = arith.constant dense<0.000000e+00> : vector<4x72xf32>
    %4 = tpu.matmul %3, %2, %cst_7 {dimension_numbers = #tpu.dot_dimension_numbers<[1], [0], [0], [1], [0, 0, 1, 1], [], []>} : vector<4x4xf32>, vector<4x72xf32>, vector<4x72xf32> -> vector<4x72xf32>
    %5 = arith.addf %0, %4 : vector<4x72xf32>
    %c0_8 = arith.constant 0 : index
    %c0_9 = arith.constant 0 : index
    %c1 = arith.constant 1 : index
    %c0_10 = arith.constant 0 : index
    %c0_11 = arith.constant 0 : index
    %c0_12 = arith.constant 0 : index
    %6 = vector.load %arg2[%c0_8, %c0_9, %c1, %c0_10, %c0_11, %c0_12] : memref<1x2x2x1x4x82xf32, #tpu.memory_space<vmem>>, vector<1x1x1x1x4x72xf32>
    %7 = vector.shape_cast %6 : vector<1x1x1x1x4x72xf32> to vector<4x72xf32>
    %c0_13 = arith.constant 0 : index
    %c4 = arith.constant 4 : index
    %8 = vector.load %arg5[%c0_13, %c4] : memref<4x108xf32, #tpu.memory_space<vmem>>, vector<4x4xf32>
    %cst_14 = arith.constant dense<0.000000e+00> : vector<4x72xf32>
    %9 = tpu.matmul %8, %7, %cst_14 {dimension_numbers = #tpu.dot_dimension_numbers<[1], [0], [0], [1], [0, 0, 1, 1], [], []>} : vector<4x4xf32>, vector<4x72xf32>, vector<4x72xf32> -> vector<4x72xf32>
    %10 = arith.addf %5, %9 : vector<4x72xf32>
    %c0_15 = arith.constant 0 : index
    %c0_16 = arith.constant 0 : index
    %c0_17 = arith.constant 0 : index
    %c0_18 = arith.constant 0 : index
    %c0_19 = arith.constant 0 : index
    %c1_20 = arith.constant 1 : index
    %11 = vector.load %arg2[%c0_15, %c0_16, %c0_17, %c0_18, %c0_19, %c1_20] : memref<1x2x2x1x4x82xf32, #tpu.memory_space<vmem>>, vector<1x1x1x1x4x72xf32>
    %12 = vector.shape_cast %11 : vector<1x1x1x1x4x72xf32> to vector<4x72xf32>
    %c0_21 = arith.constant 0 : index
    %c8 = arith.constant 8 : index
    %13 = vector.load %arg5[%c0_21, %c8] : memref<4x108xf32, #tpu.memory_space<vmem>>, vector<4x4xf32>
    %cst_22 = arith.constant dense<0.000000e+00> : vector<4x72xf32>
    %14 = tpu.matmul %13, %12, %cst_22 {dimension_numbers = #tpu.dot_dimension_numbers<[1], [0], [0], [1], [0, 0, 1, 1], [], []>} : vector<4x4xf32>, vector<4x72xf32>, vector<4x72xf32> -> vector<4x72xf32>
    %15 = arith.addf %10, %14 : vector<4x72xf32>
    %c0_23 = arith.constant 0 : index
    %c1_24 = arith.constant 1 : index
    %c0_25 = arith.constant 0 : index
    %c0_26 = arith.constant 0 : index
    %c0_27 = arith.constant 0 : index
    %c0_28 = arith.constant 0 : index
    %16 = vector.load %arg2[%c0_23, %c1_24, %c0_25, %c0_26, %c0_27, %c0_28] : memref<1x2x2x1x4x82xf32, #tpu.memory_space<vmem>>, vector<1x1x1x1x4x72xf32>
    %17 = vector.shape_cast %16 : vector<1x1x1x1x4x72xf32> to vector<4x72xf32>
    %c0_29 = arith.constant 0 : index
    %c12 = arith.constant 12 : index
    %18 = vector.load %arg5[%c0_29, %c12] : memref<4x108xf32, #tpu.memory_space<vmem>>, vector<4x4xf32>
    %cst_30 = arith.constant dense<0.000000e+00> : vector<4x72xf32>
    %19 = tpu.matmul %18, %17, %cst_30 {dimension_numbers = #tpu.dot_dimension_numbers<[1], [0], [0], [1], [0, 0, 1, 1], [], []>} : vector<4x4xf32>, vector<4x72xf32>, vector<4x72xf32> -> vector<4x72xf32>
    %20 = arith.addf %15, %19 : vector<4x72xf32>
    %c0_31 = arith.constant 0 : index
    %c1_32 = arith.constant 1 : index
    %c1_33 = arith.constant 1 : index
    %c0_34 = arith.constant 0 : index
    %c0_35 = arith.constant 0 : index
    %c0_36 = arith.constant 0 : index
    %21 = vector.load %arg2[%c0_31, %c1_32, %c1_33, %c0_34, %c0_35, %c0_36] : memref<1x2x2x1x4x82xf32, #tpu.memory_space<vmem>>, vector<1x1x1x1x4x72xf32>
    %22 = vector.shape_cast %21 : vector<1x1x1x1x4x72xf32> to vector<4x72xf32>
    %c0_37 = arith.constant 0 : index
    %c16 = arith.constant 16 : index
    %23 = vector.load %arg5[%c0_37, %c16] : memref<4x108xf32, #tpu.memory_space<vmem>>, vector<4x4xf32>
    %cst_38 = arith.constant dense<0.000000e+00> : vector<4x72xf32>
    %24 = tpu.matmul %23, %22, %cst_38 {dimension_numbers = #tpu.dot_dimension_numbers<[1], [0], [0], [1], [0, 0, 1, 1], [], []>} : vector<4x4xf32>, vector<4x72xf32>, vector<4x72xf32> -> vector<4x72xf32>
    %25 = arith.addf %20, %24 : vector<4x72xf32>
    %c0_39 = arith.constant 0 : index
    %c1_40 = arith.constant 1 : index
    %c0_41 = arith.constant 0 : index
    %c0_42 = arith.constant 0 : index
    %c0_43 = arith.constant 0 : index
    %c1_44 = arith.constant 1 : index
    %26 = vector.load %arg2[%c0_39, %c1_40, %c0_41, %c0_42, %c0_43, %c1_44] : memref<1x2x2x1x4x82xf32, #tpu.memory_space<vmem>>, vector<1x1x1x1x4x72xf32>
    %27 = vector.shape_cast %26 : vector<1x1x1x1x4x72xf32> to vector<4x72xf32>
    %c0_45 = arith.constant 0 : index
    %c20 = arith.constant 20 : index
    %28 = vector.load %arg5[%c0_45, %c20] : memref<4x108xf32, #tpu.memory_space<vmem>>, vector<4x4xf32>
    %cst_46 = arith.constant dense<0.000000e+00> : vector<4x72xf32>
    %29 = tpu.matmul %28, %27, %cst_46 {dimension_numbers = #tpu.dot_dimension_numbers<[1], [0], [0], [1], [0, 0, 1, 1], [], []>} : vector<4x4xf32>, vector<4x72xf32>, vector<4x72xf32> -> vector<4x72xf32>
    %30 = arith.addf %25, %29 : vector<4x72xf32>
    %c0_47 = arith.constant 0 : index
    %c0_48 = arith.constant 0 : index
    %c0_49 = arith.constant 0 : index
    %c0_50 = arith.constant 0 : index
    %c0_51 = arith.constant 0 : index
    %c9 = arith.constant 9 : index
    %31 = vector.load %arg2[%c0_47, %c0_48, %c0_49, %c0_50, %c0_51, %c9] : memref<1x2x2x1x4x82xf32, #tpu.memory_space<vmem>>, vector<1x1x1x1x4x72xf32>
    %32 = vector.shape_cast %31 : vector<1x1x1x1x4x72xf32> to vector<4x72xf32>
    %c0_52 = arith.constant 0 : index
    %c24 = arith.constant 24 : index
    %33 = vector.load %arg5[%c0_52, %c24] : memref<4x108xf32, #tpu.memory_space<vmem>>, vector<4x4xf32>
    %cst_53 = arith.constant dense<0.000000e+00> : vector<4x72xf32>
    %34 = tpu.matmul %33, %32, %cst_53 {dimension_numbers = #tpu.dot_dimension_numbers<[1], [0], [0], [1], [0, 0, 1, 1], [], []>} : vector<4x4xf32>, vector<4x72xf32>, vector<4x72xf32> -> vector<4x72xf32>
    %35 = arith.addf %30, %34 : vector<4x72xf32>
    %c0_54 = arith.constant 0 : index
    %c0_55 = arith.constant 0 : index
    %c1_56 = arith.constant 1 : index
    %c0_57 = arith.constant 0 : index
    %c0_58 = arith.constant 0 : index
    %c9_59 = arith.constant 9 : index
    %36 = vector.load %arg2[%c0_54, %c0_55, %c1_56, %c0_57, %c0_58, %c9_59] : memref<1x2x2x1x4x82xf32, #tpu.memory_space<vmem>>, vector<1x1x1x1x4x72xf32>
    %37 = vector.shape_cast %36 : vector<1x1x1x1x4x72xf32> to vector<4x72xf32>
    %c0_60 = arith.constant 0 : index
    %c28 = arith.constant 28 : index
    %38 = vector.load %arg5[%c0_60, %c28] : memref<4x108xf32, #tpu.memory_space<vmem>>, vector<4x4xf32>
    %cst_61 = arith.constant dense<0.000000e+00> : vector<4x72xf32>
    %39 = tpu.matmul %38, %37, %cst_61 {dimension_numbers = #tpu.dot_dimension_numbers<[1], [0], [0], [1], [0, 0, 1, 1], [], []>} : vector<4x4xf32>, vector<4x72xf32>, vector<4x72xf32> -> vector<4x72xf32>
    %40 = arith.addf %35, %39 : vector<4x72xf32>
    %c0_62 = arith.constant 0 : index
    %c0_63 = arith.constant 0 : index
    %c0_64 = arith.constant 0 : index
    %c0_65 = arith.constant 0 : index
    %c0_66 = arith.constant 0 : index
    %c10 = arith.constant 10 : index
    %41 = vector.load %arg2[%c0_62, %c0_63, %c0_64, %c0_65, %c0_66, %c10] : memref<1x2x2x1x4x82xf32, #tpu.memory_space<vmem>>, vector<1x1x1x1x4x72xf32>
    %42 = vector.shape_cast %41 : vector<1x1x1x1x4x72xf32> to vector<4x72xf32>
    %c0_67 = arith.constant 0 : index
    %c32 = arith.constant 32 : index
    %43 = vector.load %arg5[%c0_67, %c32] : memref<4x108xf32, #tpu.memory_space<vmem>>, vector<4x4xf32>
    %cst_68 = arith.constant dense<0.000000e+00> : vector<4x72xf32>
    %44 = tpu.matmul %43, %42, %cst_68 {dimension_numbers = #tpu.dot_dimension_numbers<[1], [0], [0], [1], [0, 0, 1, 1], [], []>} : vector<4x4xf32>, vector<4x72xf32>, vector<4x72xf32> -> vector<4x72xf32>
    %45 = arith.addf %40, %44 : vector<4x72xf32>
    %c0_69 = arith.constant 0 : index
    %c0_70 = arith.constant 0 : index
    %c0_71 = arith.constant 0 : index
    %c0_72 = arith.constant 0 : index
    %c0_73 = arith.constant 0 : index
    %c0_74 = arith.constant 0 : index
    %46 = vector.load %arg3[%c0_69, %c0_70, %c0_71, %c0_72, %c0_73, %c0_74] : memref<1x2x2x1x4x82xf32, #tpu.memory_space<vmem>>, vector<1x1x1x1x4x72xf32>
    %47 = vector.shape_cast %46 : vector<1x1x1x1x4x72xf32> to vector<4x72xf32>
    %c0_75 = arith.constant 0 : index
    %c36 = arith.constant 36 : index
    %48 = vector.load %arg5[%c0_75, %c36] : memref<4x108xf32, #tpu.memory_space<vmem>>, vector<4x4xf32>
    %cst_76 = arith.constant dense<0.000000e+00> : vector<4x72xf32>
    %49 = tpu.matmul %48, %47, %cst_76 {dimension_numbers = #tpu.dot_dimension_numbers<[1], [0], [0], [1], [0, 0, 1, 1], [], []>} : vector<4x4xf32>, vector<4x72xf32>, vector<4x72xf32> -> vector<4x72xf32>
    %50 = arith.addf %45, %49 : vector<4x72xf32>
    %c0_77 = arith.constant 0 : index
    %c0_78 = arith.constant 0 : index
    %c1_79 = arith.constant 1 : index
    %c0_80 = arith.constant 0 : index
    %c0_81 = arith.constant 0 : index
    %c0_82 = arith.constant 0 : index
    %51 = vector.load %arg3[%c0_77, %c0_78, %c1_79, %c0_80, %c0_81, %c0_82] : memref<1x2x2x1x4x82xf32, #tpu.memory_space<vmem>>, vector<1x1x1x1x4x72xf32>
    %52 = vector.shape_cast %51 : vector<1x1x1x1x4x72xf32> to vector<4x72xf32>
    %c0_83 = arith.constant 0 : index
    %c40 = arith.constant 40 : index
    %53 = vector.load %arg5[%c0_83, %c40] : memref<4x108xf32, #tpu.memory_space<vmem>>, vector<4x4xf32>
    %cst_84 = arith.constant dense<0.000000e+00> : vector<4x72xf32>
    %54 = tpu.matmul %53, %52, %cst_84 {dimension_numbers = #tpu.dot_dimension_numbers<[1], [0], [0], [1], [0, 0, 1, 1], [], []>} : vector<4x4xf32>, vector<4x72xf32>, vector<4x72xf32> -> vector<4x72xf32>
    %55 = arith.addf %50, %54 : vector<4x72xf32>
    %c0_85 = arith.constant 0 : index
    %c0_86 = arith.constant 0 : index
    %c0_87 = arith.constant 0 : index
    %c0_88 = arith.constant 0 : index
    %c0_89 = arith.constant 0 : index
    %c1_90 = arith.constant 1 : index
    %56 = vector.load %arg3[%c0_85, %c0_86, %c0_87, %c0_88, %c0_89, %c1_90] : memref<1x2x2x1x4x82xf32, #tpu.memory_space<vmem>>, vector<1x1x1x1x4x72xf32>
    %57 = vector.shape_cast %56 : vector<1x1x1x1x4x72xf32> to vector<4x72xf32>
    %c0_91 = arith.constant 0 : index
    %c44 = arith.constant 44 : index
    %58 = vector.load %arg5[%c0_91, %c44] : memref<4x108xf32, #tpu.memory_space<vmem>>, vector<4x4xf32>
    %cst_92 = arith.constant dense<0.000000e+00> : vector<4x72xf32>
    %59 = tpu.matmul %58, %57, %cst_92 {dimension_numbers = #tpu.dot_dimension_numbers<[1], [0], [0], [1], [0, 0, 1, 1], [], []>} : vector<4x4xf32>, vector<4x72xf32>, vector<4x72xf32> -> vector<4x72xf32>
    %60 = arith.addf %55, %59 : vector<4x72xf32>
    %c0_93 = arith.constant 0 : index
    %c1_94 = arith.constant 1 : index
    %c0_95 = arith.constant 0 : index
    %c0_96 = arith.constant 0 : index
    %c0_97 = arith.constant 0 : index
    %c0_98 = arith.constant 0 : index
    %61 = vector.load %arg3[%c0_93, %c1_94, %c0_95, %c0_96, %c0_97, %c0_98] : memref<1x2x2x1x4x82xf32, #tpu.memory_space<vmem>>, vector<1x1x1x1x4x72xf32>
    %62 = vector.shape_cast %61 : vector<1x1x1x1x4x72xf32> to vector<4x72xf32>
    %c0_99 = arith.constant 0 : index
    %c48 = arith.constant 48 : index
    %63 = vector.load %arg5[%c0_99, %c48] : memref<4x108xf32, #tpu.memory_space<vmem>>, vector<4x4xf32>
    %cst_100 = arith.constant dense<0.000000e+00> : vector<4x72xf32>
    %64 = tpu.matmul %63, %62, %cst_100 {dimension_numbers = #tpu.dot_dimension_numbers<[1], [0], [0], [1], [0, 0, 1, 1], [], []>} : vector<4x4xf32>, vector<4x72xf32>, vector<4x72xf32> -> vector<4x72xf32>
    %65 = arith.addf %60, %64 : vector<4x72xf32>
    %c0_101 = arith.constant 0 : index
    %c1_102 = arith.constant 1 : index
    %c1_103 = arith.constant 1 : index
    %c0_104 = arith.constant 0 : index
    %c0_105 = arith.constant 0 : index
    %c0_106 = arith.constant 0 : index
    %66 = vector.load %arg3[%c0_101, %c1_102, %c1_103, %c0_104, %c0_105, %c0_106] : memref<1x2x2x1x4x82xf32, #tpu.memory_space<vmem>>, vector<1x1x1x1x4x72xf32>
    %67 = vector.shape_cast %66 : vector<1x1x1x1x4x72xf32> to vector<4x72xf32>
    %c0_107 = arith.constant 0 : index
    %c52 = arith.constant 52 : index
    %68 = vector.load %arg5[%c0_107, %c52] : memref<4x108xf32, #tpu.memory_space<vmem>>, vector<4x4xf32>
    %cst_108 = arith.constant dense<0.000000e+00> : vector<4x72xf32>
    %69 = tpu.matmul %68, %67, %cst_108 {dimension_numbers = #tpu.dot_dimension_numbers<[1], [0], [0], [1], [0, 0, 1, 1], [], []>} : vector<4x4xf32>, vector<4x72xf32>, vector<4x72xf32> -> vector<4x72xf32>
    %70 = arith.addf %65, %69 : vector<4x72xf32>
    %c0_109 = arith.constant 0 : index
    %c1_110 = arith.constant 1 : index
    %c0_111 = arith.constant 0 : index
    %c0_112 = arith.constant 0 : index
    %c0_113 = arith.constant 0 : index
    %c1_114 = arith.constant 1 : index
    %71 = vector.load %arg3[%c0_109, %c1_110, %c0_111, %c0_112, %c0_113, %c1_114] : memref<1x2x2x1x4x82xf32, #tpu.memory_space<vmem>>, vector<1x1x1x1x4x72xf32>
    %72 = vector.shape_cast %71 : vector<1x1x1x1x4x72xf32> to vector<4x72xf32>
    %c0_115 = arith.constant 0 : index
    %c56 = arith.constant 56 : index
    %73 = vector.load %arg5[%c0_115, %c56] : memref<4x108xf32, #tpu.memory_space<vmem>>, vector<4x4xf32>
    %cst_116 = arith.constant dense<0.000000e+00> : vector<4x72xf32>
    %74 = tpu.matmul %73, %72, %cst_116 {dimension_numbers = #tpu.dot_dimension_numbers<[1], [0], [0], [1], [0, 0, 1, 1], [], []>} : vector<4x4xf32>, vector<4x72xf32>, vector<4x72xf32> -> vector<4x72xf32>
    %75 = arith.addf %70, %74 : vector<4x72xf32>
    %c0_117 = arith.constant 0 : index
    %c0_118 = arith.constant 0 : index
    %c0_119 = arith.constant 0 : index
    %c0_120 = arith.constant 0 : index
    %c0_121 = arith.constant 0 : index
    %c9_122 = arith.constant 9 : index
    %76 = vector.load %arg3[%c0_117, %c0_118, %c0_119, %c0_120, %c0_121, %c9_122] : memref<1x2x2x1x4x82xf32, #tpu.memory_space<vmem>>, vector<1x1x1x1x4x72xf32>
    %77 = vector.shape_cast %76 : vector<1x1x1x1x4x72xf32> to vector<4x72xf32>
    %c0_123 = arith.constant 0 : index
    %c60 = arith.constant 60 : index
    %78 = vector.load %arg5[%c0_123, %c60] : memref<4x108xf32, #tpu.memory_space<vmem>>, vector<4x4xf32>
    %cst_124 = arith.constant dense<0.000000e+00> : vector<4x72xf32>
    %79 = tpu.matmul %78, %77, %cst_124 {dimension_numbers = #tpu.dot_dimension_numbers<[1], [0], [0], [1], [0, 0, 1, 1], [], []>} : vector<4x4xf32>, vector<4x72xf32>, vector<4x72xf32> -> vector<4x72xf32>
    %80 = arith.addf %75, %79 : vector<4x72xf32>
    %c0_125 = arith.constant 0 : index
    %c0_126 = arith.constant 0 : index
    %c1_127 = arith.constant 1 : index
    %c0_128 = arith.constant 0 : index
    %c0_129 = arith.constant 0 : index
    %c9_130 = arith.constant 9 : index
    %81 = vector.load %arg3[%c0_125, %c0_126, %c1_127, %c0_128, %c0_129, %c9_130] : memref<1x2x2x1x4x82xf32, #tpu.memory_space<vmem>>, vector<1x1x1x1x4x72xf32>
    %82 = vector.shape_cast %81 : vector<1x1x1x1x4x72xf32> to vector<4x72xf32>
    %c0_131 = arith.constant 0 : index
    %c64 = arith.constant 64 : index
    %83 = vector.load %arg5[%c0_131, %c64] : memref<4x108xf32, #tpu.memory_space<vmem>>, vector<4x4xf32>
    %cst_132 = arith.constant dense<0.000000e+00> : vector<4x72xf32>
    %84 = tpu.matmul %83, %82, %cst_132 {dimension_numbers = #tpu.dot_dimension_numbers<[1], [0], [0], [1], [0, 0, 1, 1], [], []>} : vector<4x4xf32>, vector<4x72xf32>, vector<4x72xf32> -> vector<4x72xf32>
    %85 = arith.addf %80, %84 : vector<4x72xf32>
    %c0_133 = arith.constant 0 : index
    %c0_134 = arith.constant 0 : index
    %c0_135 = arith.constant 0 : index
    %c0_136 = arith.constant 0 : index
    %c0_137 = arith.constant 0 : index
    %c10_138 = arith.constant 10 : index
    %86 = vector.load %arg3[%c0_133, %c0_134, %c0_135, %c0_136, %c0_137, %c10_138] : memref<1x2x2x1x4x82xf32, #tpu.memory_space<vmem>>, vector<1x1x1x1x4x72xf32>
    %87 = vector.shape_cast %86 : vector<1x1x1x1x4x72xf32> to vector<4x72xf32>
    %c0_139 = arith.constant 0 : index
    %c68 = arith.constant 68 : index
    %88 = vector.load %arg5[%c0_139, %c68] : memref<4x108xf32, #tpu.memory_space<vmem>>, vector<4x4xf32>
    %cst_140 = arith.constant dense<0.000000e+00> : vector<4x72xf32>
    %89 = tpu.matmul %88, %87, %cst_140 {dimension_numbers = #tpu.dot_dimension_numbers<[1], [0], [0], [1], [0, 0, 1, 1], [], []>} : vector<4x4xf32>, vector<4x72xf32>, vector<4x72xf32> -> vector<4x72xf32>
    %90 = arith.addf %85, %89 : vector<4x72xf32>
    %c0_141 = arith.constant 0 : index
    %c0_142 = arith.constant 0 : index
    %c0_143 = arith.constant 0 : index
    %c0_144 = arith.constant 0 : index
    %c0_145 = arith.constant 0 : index
    %c0_146 = arith.constant 0 : index
    %91 = vector.load %arg4[%c0_141, %c0_142, %c0_143, %c0_144, %c0_145, %c0_146] : memref<1x2x2x1x4x82xf32, #tpu.memory_space<vmem>>, vector<1x1x1x1x4x72xf32>
    %92 = vector.shape_cast %91 : vector<1x1x1x1x4x72xf32> to vector<4x72xf32>
    %c0_147 = arith.constant 0 : index
    %c72 = arith.constant 72 : index
    %93 = vector.load %arg5[%c0_147, %c72] : memref<4x108xf32, #tpu.memory_space<vmem>>, vector<4x4xf32>
    %cst_148 = arith.constant dense<0.000000e+00> : vector<4x72xf32>
    %94 = tpu.matmul %93, %92, %cst_148 {dimension_numbers = #tpu.dot_dimension_numbers<[1], [0], [0], [1], [0, 0, 1, 1], [], []>} : vector<4x4xf32>, vector<4x72xf32>, vector<4x72xf32> -> vector<4x72xf32>
    %95 = arith.addf %90, %94 : vector<4x72xf32>
    %c0_149 = arith.constant 0 : index
    %c0_150 = arith.constant 0 : index
    %c1_151 = arith.constant 1 : index
    %c0_152 = arith.constant 0 : index
    %c0_153 = arith.constant 0 : index
    %c0_154 = arith.constant 0 : index
    %96 = vector.load %arg4[%c0_149, %c0_150, %c1_151, %c0_152, %c0_153, %c0_154] : memref<1x2x2x1x4x82xf32, #tpu.memory_space<vmem>>, vector<1x1x1x1x4x72xf32>
    %97 = vector.shape_cast %96 : vector<1x1x1x1x4x72xf32> to vector<4x72xf32>
    %c0_155 = arith.constant 0 : index
    %c76 = arith.constant 76 : index
    %98 = vector.load %arg5[%c0_155, %c76] : memref<4x108xf32, #tpu.memory_space<vmem>>, vector<4x4xf32>
    %cst_156 = arith.constant dense<0.000000e+00> : vector<4x72xf32>
    %99 = tpu.matmul %98, %97, %cst_156 {dimension_numbers = #tpu.dot_dimension_numbers<[1], [0], [0], [1], [0, 0, 1, 1], [], []>} : vector<4x4xf32>, vector<4x72xf32>, vector<4x72xf32> -> vector<4x72xf32>
    %100 = arith.addf %95, %99 : vector<4x72xf32>
    %c0_157 = arith.constant 0 : index
    %c0_158 = arith.constant 0 : index
    %c0_159 = arith.constant 0 : index
    %c0_160 = arith.constant 0 : index
    %c0_161 = arith.constant 0 : index
    %c1_162 = arith.constant 1 : index
    %101 = vector.load %arg4[%c0_157, %c0_158, %c0_159, %c0_160, %c0_161, %c1_162] : memref<1x2x2x1x4x82xf32, #tpu.memory_space<vmem>>, vector<1x1x1x1x4x72xf32>
    %102 = vector.shape_cast %101 : vector<1x1x1x1x4x72xf32> to vector<4x72xf32>
    %c0_163 = arith.constant 0 : index
    %c80 = arith.constant 80 : index
    %103 = vector.load %arg5[%c0_163, %c80] : memref<4x108xf32, #tpu.memory_space<vmem>>, vector<4x4xf32>
    %cst_164 = arith.constant dense<0.000000e+00> : vector<4x72xf32>
    %104 = tpu.matmul %103, %102, %cst_164 {dimension_numbers = #tpu.dot_dimension_numbers<[1], [0], [0], [1], [0, 0, 1, 1], [], []>} : vector<4x4xf32>, vector<4x72xf32>, vector<4x72xf32> -> vector<4x72xf32>
    %105 = arith.addf %100, %104 : vector<4x72xf32>
    %c0_165 = arith.constant 0 : index
    %c1_166 = arith.constant 1 : index
    %c0_167 = arith.constant 0 : index
    %c0_168 = arith.constant 0 : index
    %c0_169 = arith.constant 0 : index
    %c0_170 = arith.constant 0 : index
    %106 = vector.load %arg4[%c0_165, %c1_166, %c0_167, %c0_168, %c0_169, %c0_170] : memref<1x2x2x1x4x82xf32, #tpu.memory_space<vmem>>, vector<1x1x1x1x4x72xf32>
    %107 = vector.shape_cast %106 : vector<1x1x1x1x4x72xf32> to vector<4x72xf32>
    %c0_171 = arith.constant 0 : index
    %c84 = arith.constant 84 : index
    %108 = vector.load %arg5[%c0_171, %c84] : memref<4x108xf32, #tpu.memory_space<vmem>>, vector<4x4xf32>
    %cst_172 = arith.constant dense<0.000000e+00> : vector<4x72xf32>
    %109 = tpu.matmul %108, %107, %cst_172 {dimension_numbers = #tpu.dot_dimension_numbers<[1], [0], [0], [1], [0, 0, 1, 1], [], []>} : vector<4x4xf32>, vector<4x72xf32>, vector<4x72xf32> -> vector<4x72xf32>
    %110 = arith.addf %105, %109 : vector<4x72xf32>
    %c0_173 = arith.constant 0 : index
    %c1_174 = arith.constant 1 : index
    %c1_175 = arith.constant 1 : index
    %c0_176 = arith.constant 0 : index
    %c0_177 = arith.constant 0 : index
    %c0_178 = arith.constant 0 : index
    %111 = vector.load %arg4[%c0_173, %c1_174, %c1_175, %c0_176, %c0_177, %c0_178] : memref<1x2x2x1x4x82xf32, #tpu.memory_space<vmem>>, vector<1x1x1x1x4x72xf32>
    %112 = vector.shape_cast %111 : vector<1x1x1x1x4x72xf32> to vector<4x72xf32>
    %c0_179 = arith.constant 0 : index
    %c88 = arith.constant 88 : index
    %113 = vector.load %arg5[%c0_179, %c88] : memref<4x108xf32, #tpu.memory_space<vmem>>, vector<4x4xf32>
    %cst_180 = arith.constant dense<0.000000e+00> : vector<4x72xf32>
    %114 = tpu.matmul %113, %112, %cst_180 {dimension_numbers = #tpu.dot_dimension_numbers<[1], [0], [0], [1], [0, 0, 1, 1], [], []>} : vector<4x4xf32>, vector<4x72xf32>, vector<4x72xf32> -> vector<4x72xf32>
    %115 = arith.addf %110, %114 : vector<4x72xf32>
    %c0_181 = arith.constant 0 : index
    %c1_182 = arith.constant 1 : index
    %c0_183 = arith.constant 0 : index
    %c0_184 = arith.constant 0 : index
    %c0_185 = arith.constant 0 : index
    %c1_186 = arith.constant 1 : index
    %116 = vector.load %arg4[%c0_181, %c1_182, %c0_183, %c0_184, %c0_185, %c1_186] : memref<1x2x2x1x4x82xf32, #tpu.memory_space<vmem>>, vector<1x1x1x1x4x72xf32>
    %117 = vector.shape_cast %116 : vector<1x1x1x1x4x72xf32> to vector<4x72xf32>
    %c0_187 = arith.constant 0 : index
    %c92 = arith.constant 92 : index
    %118 = vector.load %arg5[%c0_187, %c92] : memref<4x108xf32, #tpu.memory_space<vmem>>, vector<4x4xf32>
    %cst_188 = arith.constant dense<0.000000e+00> : vector<4x72xf32>
    %119 = tpu.matmul %118, %117, %cst_188 {dimension_numbers = #tpu.dot_dimension_numbers<[1], [0], [0], [1], [0, 0, 1, 1], [], []>} : vector<4x4xf32>, vector<4x72xf32>, vector<4x72xf32> -> vector<4x72xf32>
    %120 = arith.addf %115, %119 : vector<4x72xf32>
    %c0_189 = arith.constant 0 : index
    %c0_190 = arith.constant 0 : index
    %c0_191 = arith.constant 0 : index
    %c0_192 = arith.constant 0 : index
    %c0_193 = arith.constant 0 : index
    %c9_194 = arith.constant 9 : index
    %121 = vector.load %arg4[%c0_189, %c0_190, %c0_191, %c0_192, %c0_193, %c9_194] : memref<1x2x2x1x4x82xf32, #tpu.memory_space<vmem>>, vector<1x1x1x1x4x72xf32>
    %122 = vector.shape_cast %121 : vector<1x1x1x1x4x72xf32> to vector<4x72xf32>
    %c0_195 = arith.constant 0 : index
    %c96 = arith.constant 96 : index
    %123 = vector.load %arg5[%c0_195, %c96] : memref<4x108xf32, #tpu.memory_space<vmem>>, vector<4x4xf32>
    %cst_196 = arith.constant dense<0.000000e+00> : vector<4x72xf32>
    %124 = tpu.matmul %123, %122, %cst_196 {dimension_numbers = #tpu.dot_dimension_numbers<[1], [0], [0], [1], [0, 0, 1, 1], [], []>} : vector<4x4xf32>, vector<4x72xf32>, vector<4x72xf32> -> vector<4x72xf32>
    %125 = arith.addf %120, %124 : vector<4x72xf32>
    %c0_197 = arith.constant 0 : index
    %c0_198 = arith.constant 0 : index
    %c1_199 = arith.constant 1 : index
    %c0_200 = arith.constant 0 : index
    %c0_201 = arith.constant 0 : index
    %c9_202 = arith.constant 9 : index
    %126 = vector.load %arg4[%c0_197, %c0_198, %c1_199, %c0_200, %c0_201, %c9_202] : memref<1x2x2x1x4x82xf32, #tpu.memory_space<vmem>>, vector<1x1x1x1x4x72xf32>
    %127 = vector.shape_cast %126 : vector<1x1x1x1x4x72xf32> to vector<4x72xf32>
    %c0_203 = arith.constant 0 : index
    %c100 = arith.constant 100 : index
    %128 = vector.load %arg5[%c0_203, %c100] : memref<4x108xf32, #tpu.memory_space<vmem>>, vector<4x4xf32>
    %cst_204 = arith.constant dense<0.000000e+00> : vector<4x72xf32>
    %129 = tpu.matmul %128, %127, %cst_204 {dimension_numbers = #tpu.dot_dimension_numbers<[1], [0], [0], [1], [0, 0, 1, 1], [], []>} : vector<4x4xf32>, vector<4x72xf32>, vector<4x72xf32> -> vector<4x72xf32>
    %130 = arith.addf %125, %129 : vector<4x72xf32>
    %c0_205 = arith.constant 0 : index
    %c0_206 = arith.constant 0 : index
    %c0_207 = arith.constant 0 : index
    %c0_208 = arith.constant 0 : index
    %c0_209 = arith.constant 0 : index
    %c10_210 = arith.constant 10 : index
    %131 = vector.load %arg4[%c0_205, %c0_206, %c0_207, %c0_208, %c0_209, %c10_210] : memref<1x2x2x1x4x82xf32, #tpu.memory_space<vmem>>, vector<1x1x1x1x4x72xf32>
    %132 = vector.shape_cast %131 : vector<1x1x1x1x4x72xf32> to vector<4x72xf32>
    %c0_211 = arith.constant 0 : index
    %c104 = arith.constant 104 : index
    %133 = vector.load %arg5[%c0_211, %c104] : memref<4x108xf32, #tpu.memory_space<vmem>>, vector<4x4xf32>
    %cst_212 = arith.constant dense<0.000000e+00> : vector<4x72xf32>
    %134 = tpu.matmul %133, %132, %cst_212 {dimension_numbers = #tpu.dot_dimension_numbers<[1], [0], [0], [1], [0, 0, 1, 1], [], []>} : vector<4x4xf32>, vector<4x72xf32>, vector<4x72xf32> -> vector<4x72xf32>
    %135 = arith.addf %130, %134 : vector<4x72xf32>
    %c0_213 = arith.constant 0 : index
    %c0_214 = arith.constant 0 : index
    %136 = vector.load %arg6[%c0_213, %c0_214] : memref<4x1xf32, #tpu.memory_space<vmem>>, vector<4x1xf32>
    %137 = vector.broadcast %136 : vector<4x1xf32> to vector<4x72xf32>
    %138 = arith.addf %135, %137 : vector<4x72xf32>
    %cst_215 = arith.constant 0.000000e+00 : f32
    %139 = vector.broadcast %cst_215 : f32 to vector<4x72xf32>
    %140 = arith.cmpf oge, %138, %139 : vector<4x72xf32>
    %cst_216 = arith.constant 5.000000e-02 : f32
    %141 = vector.broadcast %cst_216 : f32 to vector<4x72xf32>
    %142 = arith.mulf %141, %138 : vector<4x72xf32>
    %143 = arith.select %140, %138, %142 : vector<4x72xi1>, vector<4x72xf32>
    %c0_217 = arith.constant 0 : index
    %c0_218 = arith.constant 0 : index
    %c0_219 = arith.constant 0 : index
    %c0_220 = arith.constant 0 : index
    %144 = vector.load %arg7[%c0_217, %c0_218, %c0_219, %c0_220] : memref<1x1x4x72xf32, #tpu.memory_space<vmem>>, vector<1x1x4x72xf32>
    %145 = vector.shape_cast %144 : vector<1x1x4x72xf32> to vector<4x72xf32>
    %146 = vector.shape_cast %143 : vector<4x72xf32> to vector<1x1x4x72xf32>
    tpu.vector_store %arg7[%c0_217, %c0_218, %c0_219, %c0_220], %146 {strides = array<i32>} : memref<1x1x4x72xf32, #tpu.memory_space<vmem>>, vector<1x1x4x72xf32>,
    return
  }
  func.func @transform_0(%arg0: i32, %arg1: i32) -> (i32, i32, i32, i32, i32, i32) {
    %c2_i32 = arith.constant 2 : i32
    %0 = arith.muli %c2_i32, %arg1 : i32
    %c0_i32 = arith.constant 0 : i32
    %1 = arith.addi %0, %c0_i32 : i32
    %c0_i32_0 = arith.constant 0 : i32
    %c0_i32_1 = arith.constant 0 : i32
    %c0_i32_2 = arith.constant 0 : i32
    %c0_i32_3 = arith.constant 0 : i32
    %c0_i32_4 = arith.constant 0 : i32
    return %arg0, %c0_i32_0, %c0_i32_1, %1, %c0_i32_2, %c0_i32_3 : i32, i32, i32, i32, i32, i32
  }
  func.func @transform_1(%arg0: i32, %arg1: i32) -> (i32, i32, i32, i32, i32, i32) {
    %c2_i32 = arith.constant 2 : i32
    %0 = arith.muli %c2_i32, %arg1 : i32
    %c1_i32 = arith.constant 1 : i32
    %1 = arith.addi %0, %c1_i32 : i32
    %c0_i32 = arith.constant 0 : i32
    %c0_i32_0 = arith.constant 0 : i32
    %c0_i32_1 = arith.constant 0 : i32
    %c0_i32_2 = arith.constant 0 : i32
    %c0_i32_3 = arith.constant 0 : i32
    return %arg0, %c0_i32, %c0_i32_0, %1, %c0_i32_1, %c0_i32_2 : i32, i32, i32, i32, i32, i32
  }
  func.func @transform_2(%arg0: i32, %arg1: i32) -> (i32, i32, i32, i32, i32, i32) {
    %c2_i32 = arith.constant 2 : i32
    %0 = arith.muli %c2_i32, %arg1 : i32
    %c2_i32_0 = arith.constant 2 : i32
    %1 = arith.addi %0, %c2_i32_0 : i32
    %c0_i32 = arith.constant 0 : i32
    %c0_i32_1 = arith.constant 0 : i32
    %c0_i32_2 = arith.constant 0 : i32
    %c0_i32_3 = arith.constant 0 : i32
    %c0_i32_4 = arith.constant 0 : i32
    return %arg0, %c0_i32, %c0_i32_1, %1, %c0_i32_2, %c0_i32_3 : i32, i32, i32, i32, i32, i32
  }
  func.func @transform_3(%arg0: i32, %arg1: i32) -> (i32, i32) {
    %c0_i32 = arith.constant 0 : i32
    %c0_i32_0 = arith.constant 0 : i32
    %c0_i32_1 = arith.constant 0 : i32
    return %c0_i32, %c0_i32_0 : i32, i32
  }
  func.func @transform_4(%arg0: i32, %arg1: i32) -> (i32, i32) {
    %c0_i32 = arith.constant 0 : i32
    %c0_i32_0 = arith.constant 0 : i32
    %c0_i32_1 = arith.constant 0 : i32
    return %c0_i32, %c0_i32_0 : i32, i32
  }
  func.func @transform_5(%arg0: i32, %arg1: i32) -> (i32, i32, i32, i32) {
    %c0_i32 = arith.constant 0 : i32
    %c0_i32_0 = arith.constant 0 : i32
    %c0_i32_1 = arith.constant 0 : i32
    return %arg0, %arg1, %c0_i32, %c0_i32_0 : i32, i32, i32, i32
  }
}

</mosaic_0001>

<bundles_post_ra>
// kernel: spatial_downsampling.1
= control target key start
LH: loop header
LB: loop body
LE: loop exit
PB: predicated region body
PF: predicated region fallthrough
CT: control target
= control target key end

     0   :  { %s3732_s0 = inlined_call_operand.vmem [shape: f32[2,2,2,17,4,82], index: 0, kind: input, shape index: {}, may-alias: {0,1,2}]   ;;  %s3733_s1 = inlined_call_operand.vmem [shape: f32[2,2,2,17,4,82], index: 1, kind: input, shape index: {}, may-alias: {0,1,2}]   ;;  %s3734_s2 = inlined_call_operand.vmem [shape: f32[2,2,2,17,4,82], index: 2, kind: input, shape index: {}, may-alias: {0,1,2}]   ;;  %s3735_s3 = inlined_call_operand.vmem [shape: f32[4,108], index: 3, kind: input, shape index: {}]   ;;  %s3736_s4 = inlined_call_operand.vmem [shape: f32[4,1], index: 4, kind: input, shape index: {}]   ;;  %s3737_s5 = inlined_call_operand.vmem [shape: f32[2,8,4,72], index: 5, kind: output, shape index: {}]  }
   0x1   :  { %3743 = sst [smem:[#allocation10_spill]] %s3737_s5 }
   0x2   :  { %s3323_s18 = smov 0   ;;  %s3325_s19 = smov 0  }
   0x3   :  { %s3327_s20 = smov 0   ;;  %s3329_s21 = smov 0  }
   0x4   :  { %s3331_s22 = smov 0   ;;  %s3333_s23 = smov 0  }
   0x5   :  { %s3335_s24 = smov 0   ;;  %s3337_s25 = smov 0  }
   0x6   :  { %s3339_s26 = smov 0   ;;  %s3341_s27 = smov 0  }
   0x7   :  { %s3343_s28 = smov 0  }
   0x8 LB: > { %3744 = sst [smem:[#allocation5_spill]] %s3243_s24  ;;  %s24_s29 = sadd.s32 1, %s3251_s26  ;;  %s3259_s28 = sphi %s3343_s28, %s15_s28   ;;  %s3255_s27 = sphi %s3341_s27, %s3766_s27   ;;  %s3251_s26 = sphi %s3339_s26, %s3765_s26   ;;  %s3247_s25 = sphi %s3337_s25, %s3764_s25   ;;  %s3243_s24 = sphi %s3335_s24, %s3755_s24   ;;  %s3239_s23 = sphi %s3333_s23, %s3763_s23   ;;  %s3235_s22 = sphi %s3331_s22, %s3762_s22   ;;  %s3231_s21 = sphi %s3329_s21, %s3761_s21   ;;  %s3227_s20 = sphi %s3327_s20, %s3760_s20   ;;  %s3223_s19 = sphi %s3325_s19, %s3759_s19   ;;  %s3219_s18 = sphi %s3323_s18, %s3758_s18  }
   0x9   : > { %3745 = sst [smem:[#allocation6_spill]] %s3247_s25  ;;  %s27_s30 = sadd.s32 1, %s3255_s27 }
   0xa   : > { %3746 = sst [smem:[#allocation7_spill]] %s3251_s26  ;;  %p25_p0 = scmp.ge.s32.totalorder %s24_s29, 8 }
   0xb   : > { %s3381_s6 = sshll.u32 %s3251_s26, 1  ;;  %s38_s7 = sadd.s32 1, %s3239_s23 }
   0xc   : > { %p45_p1 = scmp.ne.s32.totalorder %s3239_s23, %s3235_s22  ;;  %s3768_s29 = smov (%p25_p0, %s24_s29), 0 }
   0xd   : > { %3747 = sst [smem:[#allocation8_spill]] %s3768_s29  ;;  %s3770_s30 = smov (!%p25_p0, %s27_s30), %s3255_s27 }
   0xe   : > { %s2766_s8 = sshll.u32 %s3768_s29, 1  ;;  %p46_p2 = scmp.eq.s32.totalorder %s3259_s28, 0 }
   0xf   : > { %p29_p3 = scmp.ge.s32.totalorder %s3770_s30, 2  ;;  %s34_s9 = ssub.s32 %s3381_s6, %s2766_s8 }
  0x10   : > { %p3394_p4 = por %p46_p2, %p45_p1  ;;  %s62_s11 = sadd.s32 1, %s3381_s6 }
  0x11   : > { %s3772_s30 = smov (%p29_p3, %s3770_s30), 0  ;;  %s64_s12 = sadd.s32 1, %s2766_s8 }
  0x12   : > { %3749 = sst [smem:[#allocation9_spill]] %s3772_s30  ;;  %s70_s13 = sadd.s32 1, %s3231_s21 }
  0x13   : > { %s33_s14 = ssub.s32 %s3255_s27, %s3772_s30  ;;  %s66_s15 = ssub.s32 %s62_s11, %s64_s12 }
  0x14   : > { %s35_s16 = sor.u32 %s34_s9, %s33_s14  ;;  %s67_s17 = sor.u32 %s66_s15, %s33_s14 }
  0x15   : > { %p36_p5 = scmp.eq.s32.totalorder %s35_s16, 0  ;;  %p68_p6 = scmp.eq.s32.totalorder %s67_s17, 0 }
  0x16   : > { %p77_p7 = scmp.ne.s32.totalorder %s3231_s21, %s3227_s20  ;;  %s94_s29 = sadd.s32 2, %s3381_s6 }
  0x17   : > { %s3408_s26 = scalar_select %p36_p5, %s3239_s23, %s38_s7  }
  0x18   : > { %s3411_s5 = scalar_select %p68_p6, %s3231_s21, %s70_s13  }
  0x19   : > { %p3415_p8 = por %p77_p7, %p46_p2  ;;  %s96_s25 = sadd.s32 2, %s2766_s8 }
  0x1a   : > { %s98_s30 = ssub.s32 %s94_s29, %s96_s25  ;;  %s102_s11 = sadd.s32 1, %s3223_s19 }
  0x1b   : > { %s99_s12 = sor.u32 %s98_s30, %s33_s14  ;;  %p109_p9 = scmp.ne.s32.totalorder %s3223_s19, %s3219_s18 }
  0x1c   : > { %p100_p10 = scmp.eq.s32.totalorder %s99_s12, 0  ;;  %p2772_p12 = scmp.ge.s32.totalorder %s3259_s28, 16 }
  0x1d   : > { %p3424_p11 = por %p109_p9, %p46_p2 }
  0x1e   : > { %s3429_s7 = scalar_select %p100_p10, %s3223_s19, %s102_s11  }
  0x1f   : > { %211 = sbr.rel (%p2772_p12) target bundleno = 65 (0x41), region = 24 }
  0x26   : > { %214 = sbr.rel (!%p3394_p4) target bundleno = 47 (0x2f), region = 28  ;;  %s216_s25 = sand.u32 (%p3394_p4), 1, %s3239_s23  }
  0x27   : > { %s3050_s29 = smul.u32 (%p3394_p4), 68, %s3255_s27  ;;  %s2773_s30 = sshll.u32 (%p3394_p4), %s216_s25, 4 }
  0x28   : > { %s218_s17 = scalar_lea.vmem (%p3394_p4), [#allocation2], %s2773_s30 }
  0x29   : > { %s221_s8 = sadd.s32 (%p3394_p4), %s3050_s29, %s3381_s6 }
  0x2a   : > { %s2775_s13 = sshll.u32 (%p3394_p4), %s221_s8, 2 }
  0x2b   : > { %s223_s16 = scalar_lea.vmem (%p3394_p4), %s3732_s0, %s2775_s13 }
  0x2c   : > { %v239_v0 = vld [vmem:[%s223_s16] sm:$0xf] (%p3394_p4)  ;;  %v241_v1 = vld [vmem:[%s223_s16 + $0x44] sm:$0xf] (%p3394_p4)  ;;  %v243_v2 = vld [vmem:[%s223_s16 + $0x88] sm:$0xf] (%p3394_p4) }
  0x2d   : > { %240 = vst [vmem:[%s218_s17] sm:$0xf] %v239_v0  ;;  %242 = vst [vmem:[%s218_s17 + $0x4] sm:$0xf] %v241_v1  ;;  %v245_v3 = vld [vmem:[%s223_s16 + $0xcc] sm:$0xf] }
  0x2e   : > { %244 = vst [vmem:[%s218_s17 + $0x8] sm:$0xf] %v243_v2  ;;  %246 = vst [vmem:[%s218_s17 + $0xc] sm:$0xf] %v245_v3 }
  0x2f PF: > { %277 = sbr.rel (!%p3415_p8) target bundleno = 56 (0x38), region = 69  ;;  %s279_s10 = sand.u32 (%p3415_p8), 1, %s3231_s21  }
  0x30   : > { %s2667_s11 = smul.u32 (%p3415_p8), 68, %s3255_s27  ;;  %s2776_s12 = sshll.u32 (%p3415_p8), %s279_s10, 4 }
  0x31   : > { %s281_s14 = scalar_lea.vmem (%p3415_p8), [#allocation3], %s2776_s12 }
  0x32   : > { %s2668_s25 = sadd.s32 (%p3415_p8), %s3381_s6, %s2667_s11 }
  0x33   : > { %s2778_s29 = sshll.u32 (%p3415_p8), %s2668_s25, 2 }
  0x34   : > { %s2670_s30 = scalar_lea.vmem (%p3415_p8), %s3733_s1, %s2778_s29 }
  0x35   : > { %v2779_v4 = vld [vmem:[%s2670_s30 + $0x4] sm:$0xf] (%p3415_p8)  ;;  %v2780_v5 = vld [vmem:[%s2670_s30 + $0x48] sm:$0xf] (%p3415_p8)  ;;  %v2781_v6 = vld [vmem:[%s2670_s30 + $0x8c] sm:$0xf] (%p3415_p8) }
  0x36   : > { %304 = vst [vmem:[%s281_s14] sm:$0xf] %v2779_v4  ;;  %306 = vst [vmem:[%s281_s14 + $0x4] sm:$0xf] %v2780_v5  ;;  %v2782_v7 = vld [vmem:[%s2670_s30 + $0xd0] sm:$0xf] }
  0x37   : > { %308 = vst [vmem:[%s281_s14 + $0x8] sm:$0xf] %v2781_v6  ;;  %310 = vst [vmem:[%s281_s14 + $0xc] sm:$0xf] %v2782_v7 }
  0x38 PF: > { %341 = sbr.rel (!%p3424_p11) target bundleno = 65 (0x41), region = 110  ;;  %s343_s24 = sand.u32 (%p3424_p11), 1, %s3223_s19  }
  0x39   : > { %s2675_s15 = smul.u32 (%p3424_p11), 68, %s3255_s27  ;;  %s2783_s16 = sshll.u32 (%p3424_p11), %s343_s24, 4 }
  0x3a   : > { %s345_s29 = scalar_lea.vmem (%p3424_p11), [#allocation4], %s2783_s16 }
  0x3b   : > { %s2676_s17 = sadd.s32 (%p3424_p11), %s3381_s6, %s2675_s15 }
  0x3c   : > { %s2785_s10 = sshll.u32 (%p3424_p11), %s2676_s17, 2 }
  0x3d   : > { %s2678_s12 = scalar_lea.vmem (%p3424_p11), %s3734_s2, %s2785_s10 }
  0x3e   : > { %v2786_v8 = vld [vmem:[%s2678_s12 + $0x8] sm:$0xf] (%p3424_p11)  ;;  %v2787_v9 = vld [vmem:[%s2678_s12 + $0x4c] sm:$0xf] (%p3424_p11)  ;;  %v2788_v10 = vld [vmem:[%s2678_s12 + $0x90] sm:$0xf] (%p3424_p11) }
  0x3f   : > { %368 = vst [vmem:[%s345_s29] sm:$0xf] %v2786_v8  ;;  %370 = vst [vmem:[%s345_s29 + $0x4] sm:$0xf] %v2787_v9  ;;  %v2789_v11 = vld [vmem:[%s2678_s12 + $0xd4] sm:$0xf] }
  0x40   : > { %372 = vst [vmem:[%s345_s29 + $0x8] sm:$0xf] %v2788_v10  ;;  %374 = vst [vmem:[%s345_s29 + $0xc] sm:$0xf] %v2789_v11 }
  0x41 PF: > { %p2790_p13 = scmp.ge.s32.totalorder %s3259_s28, 1  ;;  %p404_p0 = scmp.lt.s32.totalorder %s3259_s28, 17 }
  0x43   : > { %p405_p1 = pnand %p2790_p13, %p404_p0 }
  0x44   : > { %v3461_v12 = vld [vmem:[%s3735_s3] sm:$0xf] (!%p405_p1)  ;;  %s3261_s8 = smov (!%p405_p1), 120   ;;  %s3262_s13 = smov (!%p405_p1), 124   ;;  %v3263_v13 = vmov (!%p405_p1), 0.0   ;;  %vm3264_vm0 = vmmov (!%p405_p1), 0  }
  0x45   : > { %408 = sbr.rel (%p405_p1) target bundleno = 484 (0x1e4), region = 151  ;;  %635 = vrot.lane.b32.xlu1 (!%p405_p1), %v3461_v12, %s3261_s8  ;;  %481 = vrot.lane.b32.xlu0 (!%p405_p1), %v3461_v12, %s3262_s13  ;;  %s411_s30 = sand.u32 (!%p405_p1), 1, %s3235_s22   ;;  %vm486_vm1 = vcmask (!%p405_p1), 1043456   ;;  %vm483_vm2 = vcmask (!%p405_p1), 31744   ;;  %v3289_v23 = vmov (!%p405_p1), 0   ;;  %vm2628_vm3 = vcmask (!%p405_p1), 584704  }
  0x46   : > { %s2791_s14 = sshll.u32 (!%p405_p1), %s411_s30, 4  ;;  %2915 = vmatprep.subr.mxu0 (!%p405_p1), %v3263_v13  ;;  %2920 = vmatprep.subr.mxu1 (!%p405_p1), %v3263_v13  ;;  %s3265_s22 = smov (!%p405_p1), 116   ;;  %v2618_v24 = vld [vmem:[%s3736_s4] sm:$0xf] (!%p405_p1) }
  0x47   : > { %2917 = vmatprep.mubr.msk.f32.mxu0 (!%p405_p1), %vm3264_vm0, %v3263_v13  ;;  %2922 = vmatprep.mubr.msk.f32.mxu1 (!%p405_p1), %vm3264_vm0, %v3263_v13  ;;  %s3472_s24 = scalar_lea.vmem (!%p405_p1), [#allocation2], %s2791_s14  ;;  %s3266_s15 = smov (!%p405_p1), 127  }
  0x48   : > { %v476_v14 = vld [vmem:[%s3472_s24] sm:$0xf] (!%p405_p1)  ;;  %v2796_v15 = vld [vmem:[%s3472_s24 + $0x4] sm:$0xf] (!%p405_p1)  ;;  %v2803_v16 = vld [vmem:[%s3472_s24 + $0x8] sm:$0xf] (!%p405_p1)  ;;  %3171 = vset.pattern.permute.xlu1 (!%p405_p1), %v3289_v23  ;;  %3172 = vset.pattern.permute.xlu0 (!%p405_p1), %v3289_v23 }
  0x49   : > { %716 = vrot.lane.b32.xlu1 (!%p405_p1), %v3461_v12, %s3265_s22  ;;  %637 = vrot.lane.b32.xlu0 (!%p405_p1), %v476_v14, %s3266_s15  ;;  %s3267_s16 = smov (!%p405_p1), 112   ;;  %s3268_s17 = smov (!%p405_p1), 119   ;;  %v2806_v29 = vld [vmem:[%s3472_s24 + $0xc] sm:$0xf] (!%p405_p1) }
  0x4a   : > { %2916 = vmatpush3.msk.msra.mxu0 (!%p405_p1), %vm486_vm1, %v2796_v15  ;;  %2921 = vmatpush3.msk.msra.mxu1 (!%p405_p1), %vm486_vm1, %v476_v14  ;;  %s3269_s10 = smov (!%p405_p1), 108   ;;  %s3270_s11 = smov (!%p405_p1), 104  }
  0x4b   : > { %2923 = vmatmul.mubr.msk.f32.vlgmr.msra.gmra.mrb[0].mxu1 (!%p405_p1), %vm483_vm2, %v3461_v12  ;;  %2930 = vmatprep.subr.mxu1 (!%p405_p1), %v3263_v13  ;;  %s418_s25 = sand.u32 (!%p405_p1), 1, %s3227_s20   ;;  %s3271_s29 = smov (!%p405_p1), 118  }
  0x4c   : > { %2925 = vmatprep.subr.mxu0 %v3263_v13  ;;  %2931 = vmatpush3.msk.msra.mxu1 %vm486_vm1, %v2803_v16  ;;  %s2792_s12 = sshll.u32 %s418_s25, 4  ;;  %s3272_s6 = smov 100  }
  0x4d   : > { %876 = vrot.lane.b32.xlu1 %v2803_v16, %s3266_s15  ;;  %796 = vrot.lane.b32.xlu0 %v3461_v12, %s3267_s16  ;;  %s3273_s9 = smov 92   ;;  %s3274_s8 = smov 96  }
  0x4e   : > { %2932 = vmatprep.mubr.msk.f32.mxu1 %vm3264_vm0, %v3263_v13  ;;  %2940 = vmatprep.subr.mxu1 %v3263_v13  ;;  %s3500_s13 = scalar_lea.vmem [#allocation3], %s2792_s12  ;;  %s3275_s20 = smov 88  }
  0x4f   : > { %v3503_v17 = vld [vmem:[%s3500_s13] sm:$0xf]  ;;  %s3276_s30 = smov 80   ;;  %s3277_s14 = smov 84   ;;  %v3511_v18 = vld [vmem:[%s3500_s13 + $0x8] sm:$0xf] }
  0x50   : > { %s3278_s22 = smov 76   ;;  %s3279_s16 = smov 72   ;;  %v3520_v19 = vld [vmem:[%s3500_s13 + $0x4] sm:$0xf]  ;;  %v2827_v42 = vld [vmem:[%s3500_s13 + $0xc] sm:$0xf] }
  0x51   : > { %955 = vrot.lane.b32.xlu1 %v476_v14, %s3268_s17  ;;  %874 = vrot.lane.b32.xlu0 %v3461_v12, %s3269_s10  ;;  %s3280_s10 = smov 68   ;;  %s3281_s12 = smov 64  }
  0x52   : > { %s3752_s24 = sld [smem:[#allocation6_spill]] }
  0x55   : > { %1034 = vrot.lane.b32.xlu1 %v2796_v15, %s3268_s17  ;;  %953 = vrot.lane.b32.xlu0 %v3461_v12, %s3270_s11  ;;  %s425_s11 = sand.u32 1, %s3219_s18   ;;  %s3284_s18 = smov 52  }
  0x56   : > { %s2793_s25 = sshll.u32 %s425_s11, 4 }
  0x58   : > { %p468_p2 = scmp.lt.s32.totalorder %s3752_s24, 1 }
  0x59   : > { %1113 = vrot.lane.b32.xlu1 %v476_v14, %s3271_s29  ;;  %1032 = vrot.lane.b32.xlu0 %v3461_v12, %s3272_s6  ;;  %s3282_s6 = smov 56  }
  0x5a   : > { %s3774_s24 = smov (!%p468_p2, %s3752_s24), 1 }
  0x5d   : > { %1191 = vrot.lane.b32.xlu1 %v3461_v12, %s3273_s9  ;;  %1111 = vrot.lane.b32.xlu0 %v3461_v12, %s3274_s8  ;;  %s3283_s9 = smov 60   ;;  %s3531_s8 = scalar_lea.vmem [#allocation4], %s2793_s25 }
  0x5e   : > { %v3534_v20 = vld [vmem:[%s3531_s8] sm:$0xf]  ;;  %v3542_v21 = vld [vmem:[%s3531_s8 + $0x8] sm:$0xf]  ;;  %v3551_v22 = vld [vmem:[%s3531_s8 + $0x4] sm:$0xf] }
  0x5f   : > { %s3292_s25 = smov 24   ;;  %v2848_v57 = vld [vmem:[%s3531_s8 + $0xc] sm:$0xf]  ;;  %s3754_s8 = sld [smem:[#allocation10_spill]] }
  0x61   : > { %1351 = vrot.lane.b32.xlu1 %v3503_v17, %s3266_s15  ;;  %1271 = vrot.lane.b32.xlu0 %v3461_v12, %s3275_s20  ;;  %s3285_s20 = smov 44  }
  0x65   : > { %1430 = vrot.lane.b32.xlu1 %v3461_v12, %s3276_s30  ;;  %1349 = vrot.lane.b32.xlu0 %v3461_v12, %s3277_s14  ;;  %s3286_s30 = smov 48   ;;  %s3287_s14 = smov 40  }
  0x69   : > { %1590 = vrot.lane.b32.xlu1 %v3511_v18, %s3266_s15  ;;  %1510 = vrot.lane.b32.xlu0 %v3461_v12, %s3278_s22  ;;  %s3288_s22 = smov 36  }
  0x6d   : > { %1669 = vrot.lane.b32.xlu1 %v3503_v17, %s3268_s17  ;;  %1588 = vrot.lane.b32.xlu0 %v3461_v12, %s3279_s16  ;;  %s3290_s16 = smov 32  }
  0x71   : > { %1748 = vrot.lane.b32.xlu1 %v3520_v19, %s3268_s17  ;;  %1667 = vrot.lane.b32.xlu0 %v3461_v12, %s3280_s10 }
  0x75   : > { %1827 = vrot.lane.b32.xlu1 %v3503_v17, %s3271_s29  ;;  %1746 = vrot.lane.b32.xlu0 %v3461_v12, %s3281_s12 }
  0x79   : > { %1905 = vrot.lane.b32.xlu1 %v3461_v12, %s3282_s6  ;;  %1825 = vrot.lane.b32.xlu0 %v3461_v12, %s3283_s9 }
  0x7d   : > { %2065 = vrot.lane.b32.xlu1 %v3534_v20, %s3266_s15  ;;  %1985 = vrot.lane.b32.xlu0 %v3461_v12, %s3284_s18 }
  0x81   : > { %2144 = vrot.lane.b32.xlu1 %v3461_v12, %s3285_s20  ;;  %2063 = vrot.lane.b32.xlu0 %v3461_v12, %s3286_s30 }
  0x85   : > { %2304 = vrot.lane.b32.xlu1 %v3542_v21, %s3266_s15  ;;  %2224 = vrot.lane.b32.xlu0 %v3461_v12, %s3287_s14  ;;  %s3291_s15 = smov 28  }
  0x89   : > { %2383 = vrot.lane.b32.xlu1 %v3534_v20, %s3268_s17  ;;  %2302 = vrot.lane.b32.xlu0 %v3461_v12, %s3288_s22 }
  0x8d   : > { %2462 = vrot.lane.b32.xlu1 %v3551_v22, %s3268_s17  ;;  %2381 = vrot.lane.b32.xlu0 %v3461_v12, %s3290_s16  ;;  %s3753_s17 = sld [smem:[#allocation5_spill]] }
  0x91   : > { %2541 = vrot.lane.b32.xlu1 %v3534_v20, %s3271_s29  ;;  %2460 = vrot.lane.b32.xlu0 %v3461_v12, %s3291_s15  ;;  %s2794_s29 = sshll.u32 %s3774_s24, 3 }
  0x93   : > { %p470_p3 = scmp.lt.s32.totalorder %s3753_s17, 7 }
  0x95   : > { %2539 = vrot.lane.b32.xlu0 %v3461_v12, %s3292_s25  ;;  %2621 = vperm.xlu1 %3171, %v2618_v24   ;;  %s3776_s17 = smov (!%p470_p3, %s3753_s17), 7 }
  0x96   : > { %s473_s13 = sadd.s32 %s2794_s29, %s3776_s17 }
  0x97   : > { %s2795_s12 = sshll.u32 %s473_s13, 2 }
  0x98   : > { %s475_s18 = scalar_lea.vmem %s3754_s8, %s2795_s12 }
  0xb7   : > { %v636_v25 = vpop.permute.xlu1 %635  ;;  %v482_v26 = vpop.permute.xlu0 %481 }
  0xb8   : > { %2918 = vmatmul.mubr.msk.f32.vlgmr.msra.gmra.mrb[0].mxu0 %vm483_vm2, %v482_v26 }
  0xb9   : > { %2927 = vmatprep.mubr.msk.f32.mxu0 %vm3264_vm0, %v3263_v13 }
  0xbb   : > { %v717_v27 = vpop.permute.xlu1 %716  ;;  %v638_v28 = vpop.permute.xlu0 %637 }
  0xbc   : > { %2926 = vmatpush3.msk.msra.mxu0 %vm486_vm1, %v638_v28  ;;  %2933 = vmatmul.mubr.msk.f32.vlgmr.msra.gmra.mrb[2].mxu1 %vm483_vm2, %v717_v27 }
  0xbd   : > { %2928 = vmatmul.mubr.msk.f32.vlgmr.msra.gmra.mrb[2].mxu0 %vm483_vm2, %v636_v25  ;;  %2935 = vmatprep.subr.mxu0 %v3263_v13 }
  0xbe   : > { %2936 = vmatpush3.msk.msra.mxu0 %vm486_vm1, %v2806_v29  ;;  %2937 = vmatprep.mubr.msk.f32.mxu0 %vm3264_vm0, %v3263_v13 }
  0xbf   : > { %v877_v30 = vpop.permute.xlu1 %876  ;;  %v797_v31 = vpop.permute.xlu0 %796  ;;  %2945 = vmatprep.subr.mxu0 %v3263_v13  ;;  %2942 = vmatprep.mubr.msk.f32.mxu1 %vm3264_vm0, %v3263_v13 }
  0xc0   : > { %2941 = vmatpush3.msk.msra.mxu1 %vm486_vm1, %v877_v30 }
  0xc1   : > { %2938 = vmatmul.mubr.msk.f32.vlgmr.msra.gmra.mrb[4].mxu0 %vm483_vm2, %v797_v31  ;;  %2950 = vmatprep.subr.mxu1 %v3263_v13 }
  0xc2   : > { %2947 = vmatprep.mubr.msk.f32.mxu0 %vm3264_vm0, %v3263_v13 }
  0xc3   : > { %v956_v32 = vpop.permute.xlu1 %955  ;;  %v875_v33 = vpop.permute.xlu0 %874 }
  0xc4   : > { %2943 = vmatmul.mubr.msk.f32.vlgmr.msra.gmra.mrb[4].mxu1 %vm483_vm2, %v875_v33  ;;  %2946 = vmatpush3.msk.msra.mxu0 %vm486_vm1, %v956_v32 }
  0xc5   : > { %2955 = vmatprep.subr.mxu0 %v3263_v13  ;;  %2952 = vmatprep.mubr.msk.f32.mxu1 %vm3264_vm0, %v3263_v13 }
  0xc7   : > { %v1035_v34 = vpop.permute.xlu1 %1034  ;;  %v954_v35 = vpop.permute.xlu0 %953 }
  0xc8   : > { %2948 = vmatmul.mubr.msk.f32.vlgmr.msra.gmra.mrb[6].mxu0 %vm483_vm2, %v954_v35  ;;  %2951 = vmatpush3.msk.msra.mxu1 %vm486_vm1, %v1035_v34 }
  0xc9   : > { %2960 = vmatprep.subr.mxu1 %v3263_v13  ;;  %2957 = vmatprep.mubr.msk.f32.mxu0 %vm3264_vm0, %v3263_v13 }
  0xcb   : > { %v1114_v36 = vpop.permute.xlu1 %1113  ;;  %v1033_v37 = vpop.permute.xlu0 %1032 }
  0xcc   : > { %2953 = vmatmul.mubr.msk.f32.vlgmr.msra.gmra.mrb[6].mxu1 %vm483_vm2, %v1033_v37  ;;  %2956 = vmatpush3.msk.msra.mxu0 %vm486_vm1, %v1114_v36 }
  0xcd   : > { %2961 = vmatpush3.msk.msra.mxu1 %vm486_vm1, %v3503_v17  ;;  %2962 = vmatprep.mubr.msk.f32.mxu1 %vm3264_vm0, %v3263_v13 }
  0xce   : > { %2965 = vmatprep.subr.mxu0 %v3263_v13  ;;  %2970 = vmatprep.subr.mxu1 %v3263_v13 }
  0xcf   : > { %v1192_v38 = vpop.permute.xlu1 %1191  ;;  %v1112_v39 = vpop.permute.xlu0 %1111 }
  0xd0   : > { %2958 = vmatmul.mubr.msk.f32.vlgmr.msra.gmra.mrb[8].mxu0 %vm483_vm2, %v1112_v39  ;;  %2963 = vmatmul.mubr.msk.f32.vlgmr.msra.gmra.mrb[8].mxu1 %vm483_vm2, %v1192_v38 }
  0xd1   : > { %2966 = vmatpush3.msk.msra.mxu0 %vm486_vm1, %v3520_v19  ;;  %2967 = vmatprep.mubr.msk.f32.mxu0 %vm3264_vm0, %v3263_v13 }
  0xd2   : > { %2975 = vmatprep.subr.mxu0 %v3263_v13  ;;  %2972 = vmatprep.mubr.msk.f32.mxu1 %vm3264_vm0, %v3263_v13 }
  0xd3   : > { %v1352_v40 = vpop.permute.xlu1 %1351  ;;  %v1272_v41 = vpop.permute.xlu0 %1271 }
  0xd4   : > { %2968 = vmatmul.mubr.msk.f32.vlgmr.msra.gmra.mrb[10].mxu0 %vm483_vm2, %v1272_v41  ;;  %2971 = vmatpush3.msk.msra.mxu1 %vm486_vm1, %v1352_v40 }
  0xd5   : > { %2976 = vmatpush3.msk.msra.mxu0 %vm486_vm1, %v3511_v18  ;;  %2977 = vmatprep.mubr.msk.f32.mxu0 %vm3264_vm0, %v3263_v13 }
  0xd6   : > { %2980 = vmatprep.subr.mxu1 %v3263_v13  ;;  %2985 = vmatprep.subr.mxu0 %v3263_v13 }
  0xd7   : > { %v1431_v43 = vpop.permute.xlu1 %1430  ;;  %v1350_v44 = vpop.permute.xlu0 %1349 }
  0xd8   : > { %2973 = vmatmul.mubr.msk.f32.vlgmr.msra.gmra.mrb[10].mxu1 %vm483_vm2, %v1350_v44  ;;  %2978 = vmatmul.mubr.msk.f32.vlgmr.msra.gmra.mrb[12].mxu0 %vm483_vm2, %v1431_v43 }
  0xd9   : > { %2981 = vmatpush3.msk.msra.mxu1 %vm486_vm1, %v2827_v42  ;;  %2982 = vmatprep.mubr.msk.f32.mxu1 %vm3264_vm0, %v3263_v13 }
  0xda   : > { %2987 = vmatprep.mubr.msk.f32.mxu0 %vm3264_vm0, %v3263_v13  ;;  %2990 = vmatprep.subr.mxu1 %v3263_v13 }
  0xdb   : > { %v1591_v45 = vpop.permute.xlu1 %1590  ;;  %v1511_v46 = vpop.permute.xlu0 %1510 }
  0xdc   : > { %2983 = vmatmul.mubr.msk.f32.vlgmr.msra.gmra.mrb[12].mxu1 %vm483_vm2, %v1511_v46  ;;  %2986 = vmatpush3.msk.msra.mxu0 %vm486_vm1, %v1591_v45 }
  0xdd   : > { %2995 = vmatprep.subr.mxu0 %v3263_v13  ;;  %2992 = vmatprep.mubr.msk.f32.mxu1 %vm3264_vm0, %v3263_v13 }
  0xdf   : > { %v1670_v47 = vpop.permute.xlu1 %1669  ;;  %v1589_v48 = vpop.permute.xlu0 %1588 }
  0xe0   : > { %2988 = vmatmul.mubr.msk.f32.vlgmr.msra.gmra.mrb[14].mxu0 %vm483_vm2, %v1589_v48  ;;  %2991 = vmatpush3.msk.msra.mxu1 %vm486_vm1, %v1670_v47 }
  0xe1   : > { %2997 = vmatprep.mubr.msk.f32.mxu0 %vm3264_vm0, %v3263_v13  ;;  %3000 = vmatprep.subr.mxu1 %v3263_v13 }
  0xe3   : > { %v1749_v49 = vpop.permute.xlu1 %1748  ;;  %v1668_v50 = vpop.permute.xlu0 %1667 }
  0xe4   : > { %2993 = vmatmul.mubr.msk.f32.vlgmr.msra.gmra.mrb[14].mxu1 %vm483_vm2, %v1668_v50  ;;  %2996 = vmatpush3.msk.msra.mxu0 %vm486_vm1, %v1749_v49 }
  0xe5   : > { %3005 = vmatprep.subr.mxu0 %v3263_v13  ;;  %3002 = vmatprep.mubr.msk.f32.mxu1 %vm3264_vm0, %v3263_v13 }
  0xe7   : > { %v1828_v51 = vpop.permute.xlu1 %1827  ;;  %v1747_v52 = vpop.permute.xlu0 %1746 }
  0xe8   : > { %2998 = vmatmul.mubr.msk.f32.vlgmr.msra.gmra.mrb[16].mxu0 %vm483_vm2, %v1747_v52  ;;  %3001 = vmatpush3.msk.msra.mxu1 %vm486_vm1, %v1828_v51 }
  0xe9   : > { %3006 = vmatpush3.msk.msra.mxu0 %vm486_vm1, %v3534_v20  ;;  %3007 = vmatprep.mubr.msk.f32.mxu0 %vm3264_vm0, %v3263_v13 }
  0xea   : > { %3010 = vmatprep.subr.mxu1 %v3263_v13  ;;  %3015 = vmatprep.subr.mxu0 %v3263_v13 }
  0xeb   : > { %v1906_v53 = vpop.permute.xlu1 %1905  ;;  %v1826_v54 = vpop.permute.xlu0 %1825 }
  0xec   : > { %3003 = vmatmul.mubr.msk.f32.vlgmr.msra.gmra.mrb[16].mxu1 %vm483_vm2, %v1826_v54  ;;  %3008 = vmatmul.mubr.msk.f32.vlgmr.msra.gmra.mrb[18].mxu0 %vm483_vm2, %v1906_v53 }
  0xed   : > { %3011 = vmatpush3.msk.msra.mxu1 %vm486_vm1, %v3551_v22  ;;  %3012 = vmatprep.mubr.msk.f32.mxu1 %vm3264_vm0, %v3263_v13 }
  0xee   : > { %3020 = vmatprep.subr.mxu1 %v3263_v13  ;;  %3017 = vmatprep.mubr.msk.f32.mxu0 %vm3264_vm0, %v3263_v13 }
  0xef   : > { %v2066_v55 = vpop.permute.xlu1 %2065  ;;  %v1986_v56 = vpop.permute.xlu0 %1985 }
  0xf0   : > { %3013 = vmatmul.mubr.msk.f32.vlgmr.msra.gmra.mrb[18].mxu1 %vm483_vm2, %v1986_v56  ;;  %3016 = vmatpush3.msk.msra.mxu0 %vm486_vm1, %v2066_v55 }
  0xf1   : > { %3021 = vmatpush3.msk.msra.mxu1 %vm486_vm1, %v3542_v21  ;;  %3022 = vmatprep.mubr.msk.f32.mxu1 %vm3264_vm0, %v3263_v13 }
  0xf2   : > { %3025 = vmatprep.subr.mxu0 %v3263_v13  ;;  %3030 = vmatprep.subr.mxu1 %v3263_v13 }
  0xf3   : > { %v2145_v58 = vpop.permute.xlu1 %2144  ;;  %v2064_v59 = vpop.permute.xlu0 %2063 }
  0xf4   : > { %3018 = vmatmul.mubr.msk.f32.vlgmr.msra.gmra.mrb[20].mxu0 %vm483_vm2, %v2064_v59  ;;  %3023 = vmatmul.mubr.msk.f32.vlgmr.msra.gmra.mrb[20].mxu1 %vm483_vm2, %v2145_v58 }
  0xf5   : > { %3026 = vmatpush3.msk.msra.mxu0 %vm486_vm1, %v2848_v57  ;;  %3027 = vmatprep.mubr.msk.f32.mxu0 %vm3264_vm0, %v3263_v13 }
  0xf6   : > { %3035 = vmatprep.subr.mxu0 %v3263_v13  ;;  %3032 = vmatprep.mubr.msk.f32.mxu1 %vm3264_vm0, %v3263_v13 }
  0xf7   : > { %v2305_v60 = vpop.permute.xlu1 %2304  ;;  %v2225_v61 = vpop.permute.xlu0 %2224 }
  0xf8   : > { %3028 = vmatmul.mubr.msk.f32.vlgmr.msra.gmra.mrb[22].mxu0 %vm483_vm2, %v2225_v61  ;;  %3031 = vmatpush3.msk.msra.mxu1 %vm486_vm1, %v2305_v60 }
  0xf9   : > { %3037 = vmatprep.mubr.msk.f32.mxu0 %vm3264_vm0, %v3263_v13  ;;  %3040 = vmatprep.subr.mxu1 %v3263_v13 }
  0xfb   : > { %v2384_v62 = vpop.permute.xlu1 %2383  ;;  %v2303_v63 = vpop.permute.xlu0 %2302 }
  0xfc   : > { %3033 = vmatmul.mubr.msk.f32.vlgmr.msra.gmra.mrb[22].mxu1 %vm483_vm2, %v2303_v63  ;;  %3036 = vmatpush3.msk.msra.mxu0 %vm486_vm1, %v2384_v62 }
  0xfd   : > { %3045 = vmatprep.subr.mxu0 %v3263_v13  ;;  %3042 = vmatprep.mubr.msk.f32.mxu1 %vm3264_vm0, %v3263_v13 }
  0xff   : > { %v2463_v0 = vpop.permute.xlu1 %2462  ;;  %v2382_v1 = vpop.permute.xlu0 %2381 }
 0x100   : > { %3038 = vmatmul.mubr.msk.f32.vlgmr.msra.gmra.mrb[24].mxu0 %vm483_vm2, %v2382_v1  ;;  %3041 = vmatpush3.msk.msra.mxu1 %vm486_vm1, %v2463_v0 }
 0x101   : > { %3047 = vmatprep.mubr.msk.f32.mxu0 %vm3264_vm0, %v3263_v13 }
 0x103   : > { %v2542_v2 = vpop.permute.xlu1 %2541  ;;  %v2461_v3 = vpop.permute.xlu0 %2460 }
 0x104   : > { %3043 = vmatmul.mubr.msk.f32.vlgmr.msra.gmra.mrb[24].mxu1 %vm483_vm2, %v2461_v3  ;;  %3046 = vmatpush3.msk.msra.mxu0 %vm486_vm1, %v2542_v2 }
 0x107   : > { %v2540_v4 = vpop.permute.xlu0 %2539 }
 0x108   : > { %3048 = vmatmul.mubr.msk.f32.vlgmr.msra.gmra.mrb[26].mxu0 %vm483_vm2, %v2540_v4 }
 0x11e   : > { %v631_v5 = vpop.f32.mrb[0].mxu1 }
 0x11f   : > { %v2924_v6 = vpop.f32.mrb[1].mxu1 }
 0x18b   : > { %v556_v7 = vpop.f32.mrb[0].mxu0 }
 0x18c   : > { %v632_v8 = vadd.f32 %v631_v5, %v556_v7  ;;  %v2919_v9 = vpop.f32.mrb[1].mxu0 }
 0x18f   : > { %v789_v10 = vpop.f32.mrb[2].mxu1 }
 0x190   : > { %v709_v11 = vpop.f32.mrb[2].mxu0  ;;  %v2934_v12 = vpop.f32.mrb[3].mxu1 }
 0x191   : > { %v713_v14 = vadd.f32 %v709_v11, %v632_v8  ;;  %v2929_v15 = vpop.f32.mrb[3].mxu0 }
 0x193   : > { %v793_v13 = vadd.f32 %v789_v10, %v713_v14 }
 0x194   : > { %v869_v16 = vpop.f32.mrb[4].mxu0 }
 0x195   : > { %v873_v17 = vadd.f32 %v869_v16, %v793_v13  ;;  %v2939_v18 = vpop.f32.mrb[5].mxu0 }
 0x197   : > { %v948_v19 = vpop.f32.mrb[4].mxu1 }
 0x198   : > { %v952_v20 = vadd.f32 %v948_v19, %v873_v17  ;;  %v2944_v21 = vpop.f32.mrb[5].mxu1  ;;  %v2622_v19 = vpop.permute.xlu1 %2621 }
 0x19b   : > { %v1027_v22 = vpop.f32.mrb[6].mxu0 }
 0x19c   : > { %v1031_v23 = vadd.f32 %v1027_v22, %v952_v20  ;;  %v2949_v24 = vpop.f32.mrb[7].mxu0 }
 0x19f   : > { %v1106_v25 = vpop.f32.mrb[6].mxu1 }
 0x1a0   : > { %v1110_v26 = vadd.f32 %v1106_v25, %v1031_v23  ;;  %v2954_v27 = vpop.f32.mrb[7].mxu1 }
 0x1a3   : > { %v1185_v28 = vpop.f32.mrb[8].mxu0  ;;  %v1264_v29 = vpop.f32.mrb[8].mxu1 }
 0x1a4   : > { %v1189_v30 = vadd.f32 %v1185_v28, %v1110_v26  ;;  %v2959_v31 = vpop.f32.mrb[9].mxu0  ;;  %v2964_v32 = vpop.f32.mrb[9].mxu1 }
 0x1a6   : > { %v1268_v33 = vadd.f32 %v1264_v29, %v1189_v30 }
 0x1a7   : > { %v1344_v34 = vpop.f32.mrb[10].mxu0 }
 0x1a8   : > { %v1348_v35 = vadd.f32 %v1344_v34, %v1268_v33  ;;  %v2969_v36 = vpop.f32.mrb[11].mxu0 }
 0x1ab   : > { %v1423_v37 = vpop.f32.mrb[10].mxu1  ;;  %v1503_v38 = vpop.f32.mrb[12].mxu0 }
 0x1ac   : > { %v1427_v39 = vadd.f32 %v1423_v37, %v1348_v35  ;;  %v2974_v40 = vpop.f32.mrb[11].mxu1  ;;  %v2979_v41 = vpop.f32.mrb[13].mxu0 }
 0x1ae   : > { %v1507_v42 = vadd.f32 %v1503_v38, %v1427_v39 }
 0x1af   : > { %v1583_v43 = vpop.f32.mrb[12].mxu1 }
 0x1b0   : > { %v1587_v44 = vadd.f32 %v1583_v43, %v1507_v42  ;;  %v2984_v45 = vpop.f32.mrb[13].mxu1 }
 0x1b3   : > { %v1662_v46 = vpop.f32.mrb[14].mxu0 }
 0x1b4   : > { %v1666_v47 = vadd.f32 %v1662_v46, %v1587_v44  ;;  %v2989_v48 = vpop.f32.mrb[15].mxu0 }
 0x1b7   : > { %v1741_v49 = vpop.f32.mrb[14].mxu1 }
 0x1b8   : > { %v1745_v50 = vadd.f32 %v1741_v49, %v1666_v47  ;;  %v2994_v51 = vpop.f32.mrb[15].mxu1 }
 0x1bb   : > { %v1820_v52 = vpop.f32.mrb[16].mxu0 }
 0x1bc   : > { %v1824_v53 = vadd.f32 %v1820_v52, %v1745_v50  ;;  %v2999_v54 = vpop.f32.mrb[17].mxu0 }
 0x1bf   : > { %v1899_v55 = vpop.f32.mrb[16].mxu1  ;;  %v1978_v56 = vpop.f32.mrb[18].mxu0 }
 0x1c0   : > { %v1903_v57 = vadd.f32 %v1899_v55, %v1824_v53  ;;  %v3004_v58 = vpop.f32.mrb[17].mxu1  ;;  %v3009_v59 = vpop.f32.mrb[19].mxu0 }
 0x1c2   : > { %v1982_v60 = vadd.f32 %v1978_v56, %v1903_v57 }
 0x1c3   : > { %v2058_v61 = vpop.f32.mrb[18].mxu1 }
 0x1c4   : > { %v2062_v62 = vadd.f32 %v2058_v61, %v1982_v60  ;;  %v3014_v63 = vpop.f32.mrb[19].mxu1 }
 0x1c7   : > { %v2137_v0 = vpop.f32.mrb[20].mxu0  ;;  %v2217_v1 = vpop.f32.mrb[20].mxu1 }
 0x1c8   : > { %v2141_v2 = vadd.f32 %v2137_v0, %v2062_v62  ;;  %v3019_v3 = vpop.f32.mrb[21].mxu0  ;;  %v3024_v4 = vpop.f32.mrb[21].mxu1 }
 0x1ca   : > { %v2221_v5 = vadd.f32 %v2217_v1, %v2141_v2 }
 0x1cb   : > { %v2297_v6 = vpop.f32.mrb[22].mxu0 }
 0x1cc   : > { %v2301_v7 = vadd.f32 %v2297_v6, %v2221_v5  ;;  %v3029_v8 = vpop.f32.mrb[23].mxu0 }
 0x1cf   : > { %v2376_v9 = vpop.f32.mrb[22].mxu1 }
 0x1d0   : > { %v2380_v10 = vadd.f32 %v2376_v9, %v2301_v7  ;;  %v3034_v11 = vpop.f32.mrb[23].mxu1 }
 0x1d3   : > { %v2455_v12 = vpop.f32.mrb[24].mxu0 }
 0x1d4   : > { %v2459_v14 = vadd.f32 %v2455_v12, %v2380_v10  ;;  %v3039_v15 = vpop.f32.mrb[25].mxu0 }
 0x1d7   : > { %v2534_v13 = vpop.f32.mrb[24].mxu1 }
 0x1d8   : > { %v2538_v16 = vadd.f32 %v2534_v13, %v2459_v14  ;;  %v3044_v17 = vpop.f32.mrb[25].mxu1 }
 0x1db   : > { %v2613_v18 = vpop.f32.mrb[26].mxu0 }
 0x1dc   : > { %v2617_v20 = vadd.f32 %v2613_v18, %v2538_v16  ;;  %v3049_v21 = vpop.f32.mrb[27].mxu0 }
 0x1de   : > { %v2624_v22 = vadd.f32 %v2622_v19, %v2617_v20 }
 0x1e0   : > { %vm2625_vm4 = vcmp.ge.f32.partialorder %v2624_v22, 0.0  ;;  %v2626_v23 = vmul.f32 0.05, %v2624_v22 }
 0x1e2   : > { %v2627_v24 = vsel %vm2625_vm4, %v2624_v22, %v2626_v23 }
 0x1e3   : > { %2629 = vst.msk [vmem:[%s475_s18] sm:$0xf] %vm2628_vm3, %v2627_v24 }
 0x1e4 PF: > { %s15_s28 = sadd.s32 1, %s3259_s28   ;;  %s3755_s24 = sld [smem:[#allocation7_spill]] }
 0x1e5   : > { %p12_p4 = scmp.ge.s32.totalorder %s15_s28, 18   ;;  %s3756_s30 = sld [smem:[#allocation8_spill]] }
 0x1e6   : > { %s3757_s14 = sld [smem:[#allocation9_spill]]  ;;  %s3758_s18 = smov %s3223_s19 }
 0x1e7   : > { %s3759_s19 = smov %s3429_s7  ;;  %s3760_s20 = smov %s3231_s21 }
 0x1e8   : > { %s3761_s21 = smov %s3411_s5  ;;  %s3762_s22 = smov %s3239_s23 }
 0x1e9   : > { %s3763_s23 = smov %s3408_s26  ;;  %s3764_s25 = smov %s3255_s27 }
 0x1ea   :  { %14 = sbr.rel (!%p12_p4) target bundleno = 8 (0x8), region = 223 }
 0x1eb   : > { %s3765_s26 = smov %s3756_s30 }
 0x1ec   : > { %s3766_s27 = smov %s3757_s14 }

</bundles_post_ra>
